<compile_context>
chip_gen: v6e
topology: v6e:2x2x1
jax: 0.10.0
libtpu: 0.0.40
codegen_flags: <defaults>
</compile_context>

<pallas_src>
import functools

import jax
import jax.numpy as jnp
from jax import lax
from jax.experimental import pallas as pl
from jax.experimental.pallas import tpu as pltpu

# ---------------- config (would come from local_running_params) ----------------
NUM_STEPS = 4       # activations.common.num_steps
LIF_BETA = 0.9      # activations.common.beta
BN_EPS = 1e-5

TARGET_BLOCK_BYTES = 2 << 20            # ~2 MiB f32 x-blocks (>=85% of HBM roofline)
MAX_TILE_W = 8192                       # lane cap per block (multiple of 128)
VMEM_LIMIT_BYTES = 16 * 1024 * 1024     # x+out double-buffered at 2 MiB ~= 8.5 MiB


def _pick_tiles(n_rows, w):
    """Block sizing by bytes.  Lane axis (W = C*L): full extent when it fits,
    else a 128-aligned cap.  Sublane axis (N): sized so one f32 block is
    ~TARGET_BLOCK_BYTES, multiple of 8 (or full extent when N is small)."""
    tile_w = w if w <= MAX_TILE_W else MAX_TILE_W
    nb_w = pl.cdiv(w, tile_w)
    rows = TARGET_BLOCK_BYTES // (4 * tile_w)
    rows = max(8, (rows // 8) * 8)
    tile_n = n_rows if n_rows <= rows else rows
    nb_n = pl.cdiv(n_rows, tile_n)
    return tile_n, nb_n, tile_w, nb_w


# ---------------- pass 1: row-reduced sum / sum-of-squares ----------------------
def _bn_stats_kernel(x_ref, sum_ref, sumsq_ref, *, tile_n, n_rows, mask_rows):
    """x: (tile_n, tile_w).  Reduce over rows (sublanes) into resident (1, tile_w)
    accumulators; per-channel reduction over L finishes on tiny arrays in the
    wrapper.  Out-of-bounds rows of the last partial block are masked to zero;
    out-of-bounds lanes only pollute lanes that Pallas discards on writeback."""
    @pl.when(pl.program_id(1) == 0)
    def _():
        sum_ref[...] = jnp.zeros_like(sum_ref)
        sumsq_ref[...] = jnp.zeros_like(sumsq_ref)

    x = x_ref[...]
    if mask_rows:
        row = (lax.broadcasted_iota(jnp.int32, x.shape, 0)
               + pl.program_id(1) * tile_n)
        x = jnp.where(row < n_rows, x, 0.0)
    sum_ref[...] += jnp.sum(x, axis=0, keepdims=True)
    sumsq_ref[...] += jnp.sum(x * x, axis=0, keepdims=True)


# ---------------- pass 2: folded BN + LIF + spike-rate mean ---------------------
def _lif_kernel(x_ref, thr_ref, scale_ref, shift_ref, out_ref):
    """x/out: (tile_n, tile_w); thr/scale/shift: resident (1, tile_w) rows that
    broadcast over sublanes (batch)."""
    x = x_ref[...]
    thr = thr_ref[...]

    # Folded BatchNorm affine: one mul + one add per element.
    a = x * scale_ref[...] + shift_ref[...]

    inv_steps = jnp.float32(1.0 / NUM_STEPS)
    zero = jnp.float32(0.0)

    # Peeled step 0 (mem starts at 0): the reset term H(0 - thr)*thr only fires
    # for negative thresholds; it is a select on the tiny (1, tile_w) row and is
    # kept for exactness under non-default threshold inits.
    mem = a - jnp.where(thr < zero, thr, zero)
    mask = mem > thr                              # spike_0 == reset of step 1
    acc = jnp.where(mask, inv_steps, zero)        # mean folded into accumulator

    for _ in range(NUM_STEPS - 1):                # static unroll (num_steps small)
        mem = LIF_BETA * mem + a - jnp.where(mask, thr, zero)
        mask = mem > thr
        acc = acc + jnp.where(mask, inv_steps, zero)
    # TODO(synk): second_chance_of_firing in the PyTorch source references
    # undefined variables (its formulas live only in string literals), so the
    # second-chance path is treated as disabled (second_chance=False).

    out_ref[...] = acc.astype(out_ref.dtype)


# ---------------- wrapper --------------------------------------------------------
def spike_activation(x, gamma, bias, threshold):
    """x: (N, C, L); gamma/bias: (C,); threshold: (C, L). Returns (N, C, L) f32."""
    n, c, l = x.shape
    w = c * l

    # FREE layout-preserving reshapes (no transpose/pad/slice copies): batch on
    # sublanes, flattened (channel, time) on lanes.  Threshold and per-channel
    # affine are naturally single resident (1, W) rows in this layout.
    x2 = x.astype(jnp.float32).reshape(n, w)
    thr_row = threshold.astype(jnp.float32).reshape(1, w)

    tile_n, nb_n, tile_w, nb_w = _pick_tiles(n, w)
    mask_rows = (n % tile_n) != 0

    cparams_stats = pltpu.CompilerParams(
        dimension_semantics=("parallel", "arbitrary"),   # W blocks || , rows = reduction
        vmem_limit_bytes=VMEM_LIMIT_BYTES)
    cparams_elem = pltpu.CompilerParams(
        dimension_semantics=("parallel", "parallel"),
        vmem_limit_bytes=VMEM_LIMIT_BYTES)

    # ---- pass 1: per-lane sums over the batch axis ----
    stats_kernel = functools.partial(
        _bn_stats_kernel, tile_n=tile_n, n_rows=n, mask_rows=mask_rows)
    s_row, ss_row = pl.pallas_call(
        stats_kernel,
        out_shape=(jax.ShapeDtypeStruct((1, w), jnp.float32),
                   jax.ShapeDtypeStruct((1, w), jnp.float32)),
        grid=(nb_w, nb_n),
        in_specs=[pl.BlockSpec((tile_n, tile_w), lambda j, i: (i, j))],
        out_specs=(pl.BlockSpec((1, tile_w), lambda j, i: (0, j)),
                   pl.BlockSpec((1, tile_w), lambda j, i: (0, j))),
        compiler_params=cparams_stats,
    )(x2)

    # ---- fold BatchNorm into per-channel scale/shift (tiny (C,)-sized math) ----
    cnt = jnp.float32(n * l)
    s_c = jnp.sum(s_row.reshape(c, l), axis=1)
    ss_c = jnp.sum(ss_row.reshape(c, l), axis=1)
    mean = s_c / cnt
    # TODO(synk): E[x^2]-mean^2 is cancellation-prone when |mean| >> std; matches
    # biased BN variance for typical inputs but is less robust than two-pass.
    var = jnp.maximum(ss_c / cnt - mean * mean, 0.0)
    scale_c = gamma.astype(jnp.float32) * lax.rsqrt(var + BN_EPS)
    shift_c = bias.astype(jnp.float32) - mean * scale_c
    scale_row = jnp.repeat(scale_c, l).reshape(1, w)   # lane-aligned with x2
    shift_row = jnp.repeat(shift_c, l).reshape(1, w)

    # ---- pass 2: folded BN + LIF + spike-rate mean (one in stream, one out) ----
    out2 = pl.pallas_call(
        _lif_kernel,
        out_shape=jax.ShapeDtypeStruct((n, w), jnp.float32),
        grid=(nb_w, nb_n),
        in_specs=[pl.BlockSpec((tile_n, tile_w), lambda j, i: (i, j)),   # x
                  pl.BlockSpec((1, tile_w), lambda j, i: (0, j)),        # threshold (resident)
                  pl.BlockSpec((1, tile_w), lambda j, i: (0, j)),        # scale (resident)
                  pl.BlockSpec((1, tile_w), lambda j, i: (0, j))],       # shift (resident)
        out_specs=pl.BlockSpec((tile_n, tile_w), lambda j, i: (i, j)),
        compiler_params=cparams_elem,
    )(x2, thr_row, scale_row, shift_row)

    return out2.reshape(n, c, l)


# ---------------- pure-JAX reference (mirrors the PyTorch module) ---------------
def spike_activation_ref(x, gamma, bias, threshold):
    x = x.astype(jnp.float32)
    mean = jnp.mean(x, axis=(0, 2), keepdims=True)
    var = jnp.mean((x - mean) ** 2, axis=(0, 2), keepdims=True)
    a = (x - mean) / jnp.sqrt(var + BN_EPS) * gamma.reshape(1, -1, 1) + bias.reshape(1, -1, 1)
    thr = threshold[None]
    mem = jnp.zeros_like(a)
    spikes = []
    for _ in range(NUM_STEPS):
        reset = (mem - thr > 0.0).astype(jnp.float32)
        mem = LIF_BETA * mem + a - reset * thr
        spikes.append((mem - thr > 0.0).astype(jnp.float32))
    return jnp.mean(jnp.stack(spikes, axis=-1), axis=-1)


if __name__ == "__main__":
    key = jax.random.PRNGKey(0)
    k_x, k_thr = jax.random.split(key)

    N, C, L = 2, 4, 16                      # batch, num_features, window_size
    x = jax.random.normal(k_x, (N, C, L), dtype=jnp.float32)

    # Parameters (deterministic, per module __init__):
    #   BatchNorm1d default init: weight=1, bias=0
    #   threshold_init='random', granularity='neuron' -> shape (C, L), U[0,1)
    gamma = jnp.ones((C,), dtype=jnp.float32)
    bias = jnp.zeros((C,), dtype=jnp.float32)
    threshold = jax.random.uniform(k_thr, (C, L), dtype=jnp.float32)

    out = spike_activation(x, gamma, bias, threshold)
    out = jax.block_until_ready(out)

    ref = spike_activation_ref(x, gamma, bias, threshold)
    assert out.shape == (N, C, L)
    max_err = float(jnp.max(jnp.abs(out - ref)))
    assert max_err < 1e-5, f"mismatch vs reference: {max_err}"

    print("KERNEL_OK")
</pallas_src>

<mosaic_0001>
module attributes {stable_mosaic.version = 11 : i64} {
  func.func @_bn_stats_kernel(%arg0: i32, %arg1: i32, %arg2: memref<2x64xf32, #tpu.memory_space<vmem>>, %arg3: memref<1x64xf32, #tpu.memory_space<vmem>>, %arg4: memref<1x64xf32, #tpu.memory_space<vmem>>) attributes {dimension_semantics = [#tpu.dimension_semantics<parallel>, #tpu.dimension_semantics<arbitrary>], iteration_bounds = array<i64: 1, 1>, scalar_prefetch = 0 : i64, scratch_operands = 0 : i64, tpu.core_type = #tpu.core_type<tc>, window_params = [{transform_indices = @transform_0, window_bounds = array<i64: 2, 64>}, {transform_indices = @transform_1, window_bounds = array<i64: 1, 64>}, {transform_indices = @transform_2, window_bounds = array<i64: 1, 64>}]} {
    %c0_i32 = arith.constant 0 : i32
    %0 = arith.cmpi eq, %arg1, %c0_i32 : i32
    %1 = arith.extui %0 : i1 to i32
    %c0_i32_0 = arith.constant 0 : i32
    %2 = arith.cmpi ne, %1, %c0_i32_0 : i32
    scf.if %2 {
      %cst_11 = arith.constant 0.000000e+00 : f32
      %15 = vector.broadcast %cst_11 : f32 to vector<1x64xf32>
      %c0_12 = arith.constant 0 : index
      %c0_13 = arith.constant 0 : index
      %16 = vector.load %arg3[%c0_12, %c0_13] : memref<1x64xf32, #tpu.memory_space<vmem>>, vector<1x64xf32>
      tpu.vector_store %arg3[%c0_12, %c0_13], %15 {strides = array<i32>} : memref<1x64xf32, #tpu.memory_space<vmem>>, vector<1x64xf32>,
      %cst_14 = arith.constant 0.000000e+00 : f32
      %17 = vector.broadcast %cst_14 : f32 to vector<1x64xf32>
      %c0_15 = arith.constant 0 : index
      %c0_16 = arith.constant 0 : index
      %18 = vector.load %arg4[%c0_15, %c0_16] : memref<1x64xf32, #tpu.memory_space<vmem>>, vector<1x64xf32>
      tpu.vector_store %arg4[%c0_15, %c0_16], %17 {strides = array<i32>} : memref<1x64xf32, #tpu.memory_space<vmem>>, vector<1x64xf32>,
    } else {
    }
    %c0 = arith.constant 0 : index
    %c0_1 = arith.constant 0 : index
    %3 = vector.load %arg2[%c0, %c0_1] : memref<2x64xf32, #tpu.memory_space<vmem>>, vector<2x64xf32>
    %c0_2 = arith.constant 0 : index
    %c0_3 = arith.constant 0 : index
    %4 = vector.load %arg3[%c0_2, %c0_3] : memref<1x64xf32, #tpu.memory_space<vmem>>, vector<1x64xf32>
    %cst = arith.constant dense<0.000000e+00> : vector<64xf32>
    %5 = vector.multi_reduction <add>, %3, %cst [0] : vector<2x64xf32> to vector<64xf32>
    %6 = vector.shape_cast %5 : vector<64xf32> to vector<1x64xf32>
    %7 = arith.addf %4, %6 : vector<1x64xf32>
    %c0_4 = arith.constant 0 : index
    %c0_5 = arith.constant 0 : index
    %8 = vector.load %arg3[%c0_4, %c0_5] : memref<1x64xf32, #tpu.memory_space<vmem>>, vector<1x64xf32>
    tpu.vector_store %arg3[%c0_4, %c0_5], %7 {strides = array<i32>} : memref<1x64xf32, #tpu.memory_space<vmem>>, vector<1x64xf32>,
    %c0_6 = arith.constant 0 : index
    %c0_7 = arith.constant 0 : index
    %9 = vector.load %arg4[%c0_6, %c0_7] : memref<1x64xf32, #tpu.memory_space<vmem>>, vector<1x64xf32>
    %10 = arith.mulf %3, %3 : vector<2x64xf32>
    %cst_8 = arith.constant dense<0.000000e+00> : vector<64xf32>
    %11 = vector.multi_reduction <add>, %10, %cst_8 [0] : vector<2x64xf32> to vector<64xf32>
    %12 = vector.shape_cast %11 : vector<64xf32> to vector<1x64xf32>
    %13 = arith.addf %9, %12 : vector<1x64xf32>
    %c0_9 = arith.constant 0 : index
    %c0_10 = arith.constant 0 : index
    %14 = vector.load %arg4[%c0_9, %c0_10] : memref<1x64xf32, #tpu.memory_space<vmem>>, vector<1x64xf32>
    tpu.vector_store %arg4[%c0_9, %c0_10], %13 {strides = array<i32>} : memref<1x64xf32, #tpu.memory_space<vmem>>, vector<1x64xf32>,
    return
  }
  func.func @transform_0(%arg0: i32, %arg1: i32) -> (i32, i32) {
    %c0_i32 = arith.constant 0 : i32
    return %arg1, %arg0 : i32, i32
  }
  func.func @transform_1(%arg0: i32, %arg1: i32) -> (i32, i32) {
    %c0_i32 = arith.constant 0 : i32
    %c0_i32_0 = arith.constant 0 : i32
    return %c0_i32, %arg0 : i32, i32
  }
  func.func @transform_2(%arg0: i32, %arg1: i32) -> (i32, i32) {
    %c0_i32 = arith.constant 0 : i32
    %c0_i32_0 = arith.constant 0 : i32
    return %c0_i32, %arg0 : i32, i32
  }
}

</mosaic_0001>

<bundles_post_ra>
// kernel: tpu_custom_call.1
= control target key start
LH: loop header
LB: loop body
LE: loop exit
PB: predicated region body
PF: predicated region fallthrough
CT: control target
= control target key end

     0   :  { %8 = vsyncpa [#allocation3], 0  ;;  %s186_s0 = inlined_call_operand.hbm [shape: f32[2,64], index: 0, kind: input, shape index: {}]   ;;  %s187_s1 = inlined_call_operand.hbm [shape: f32[1,64], index: 1, kind: output, shape index: {0}]   ;;  %s188_s2 = inlined_call_operand.hbm [shape: f32[1,64], index: 2, kind: output, shape index: {1}]  }
   0x1   :  { %9 = vsyncpa [#allocation4], 0 }
   0x2   :  { %10 = vsyncpa [#allocation7], 0  ;;  %s154_s9 = smov [#allocation2]  }
   0x3   :  { %s17_s10 = sshll.u32 %s154_s9, 4  ;;  %s18_s10 = int_to_ptr.vmem [resolvable:$true] %s17_s10 }
   0x4   :  { %s96_s11 = scalar_lea.vmem %s18_s10, 32  ;;  %p101_p1 = scmp.lt.s32.totalorder %s18_s10, %s18_s10 }
   0x5   :  { %p97_p0 = scmp.ne.s32.totalorder %s18_s10, %s96_s11  ;;  %p102_p2 = scmp.lt.s32.totalorder %s96_s11, %s96_s11 }
   0x7   :  { %p103_p3 = por %p102_p2, %p101_p1 }
   0x9   :  { %p104_p4 = pnand %p103_p3, %p97_p0 }
   0xb   :  { %107 = shalt.err (!%p104_p4)
}
   0xc   :  { %20 = dma.hbm_to_vmem [thread:$0]  %s186_s0, 32, %s18_s10, [#allocation3]  }
   0xd   :  { %148 = dma.done.wait [#allocation3], 32  }
   0xe   :  { %149 = vsyncadd [#allocation3], 4294967264  ;;  %vm28_vm0 = vcmask 516096   ;;  %v155_v0 = vmov 0.0   ;;  %vm33_vm1 = vcmask 517120   ;;  %s156_s0 = smov [#allocation5]  }
   0xf   :  { %29 = vst.msk [vmem:[#allocation5] sm:$0x1] %vm28_vm0, %v155_v0  ;;  %30 = vst.msk [vmem:[#allocation6] sm:$0x1] %vm28_vm0, %v155_v0  ;;  %v31_v1 = vld [vmem:[#allocation2] sm:$0x3] }
  0x10   :  { %v34_v2 = vsel %vm33_vm1, %v31_v1, 0.0  ;;  %v45_v3 = vmul.f32 %v31_v1, %v31_v1  ;;  %s61_s14 = sshll.u32 %s156_s0, 4  ;;  %s157_s15 = smov [#allocation6]   ;;  %s62_s14 = int_to_ptr.vmem [resolvable:$true] %s61_s14 }
  0x11   :  { %v35_v4 = vrot.slane %v34_v2, 4  ;;  %s71_s16 = sshll.u32 %s157_s15, 4  ;;  %s108_s17 = scalar_lea.vmem %s62_s14, 16  ;;  %s72_s16 = int_to_ptr.vmem [resolvable:$true] %s71_s16 }
  0x12   :  { %v46_v5 = vsel %vm33_vm1, %v45_v3, 0.0  ;;  %p109_p5 = scmp.ne.s32.totalorder %s62_s14, %s108_s17  ;;  %s112_s18 = scalar_lea.vmem %s62_s14, 32 }
  0x13   :  { %v36_v6 = vadd.f32 %v35_v4, %v34_v2  ;;  %v47_v7 = vrot.slane %v46_v5, 4  ;;  %p113_p6 = scmp.lt.s32.totalorder %s62_s14, %s62_s14  ;;  %p114_p7 = scmp.lt.s32.totalorder %s112_s18, %s108_s17 }
  0x15   :  { %v37_v8 = vrot.slane %v36_v6, 2  ;;  %v48_v9 = vadd.f32 %v47_v7, %v46_v5  ;;  %p115_p8 = por %p114_p7, %p113_p6 }
  0x16   :  { %v32_v14 = vld [vmem:[#allocation5] sm:$0x1]  ;;  %v44_v17 = vld [vmem:[#allocation6] sm:$0x1] }
  0x17   :  { %v38_v10 = vadd.f32 %v37_v8, %v36_v6  ;;  %v49_v11 = vrot.slane %v48_v9, 2  ;;  %p116_p9 = pnand %p115_p8, %p109_p5 }
  0x19   :  { %v39_v12 = vrot.slane %v38_v10, 1  ;;  %v50_v13 = vadd.f32 %v49_v11, %v48_v9 }
  0x1b   :  { %v40_v15 = vadd.f32 %v39_v12, %v38_v10  ;;  %v51_v16 = vrot.slane %v50_v13, 1 }
  0x1d   :  { %v41_v18 = vadd.f32 %v40_v15, %v32_v14  ;;  %v52_v19 = vadd.f32 %v51_v16, %v50_v13 }
  0x1f   :  { %43 = vst.msk [vmem:[#allocation5] sm:$0x1] %vm28_vm0, %v41_v18  ;;  %v53_v20 = vadd.f32 %v52_v19, %v44_v17 }
  0x20   :  { %119 = shalt.err (!%p116_p9)
}
  0x21   :  { %64 = dma.vmem_to_hbm [thread:$0]  %s62_s14, 16, %s187_s1, [#allocation4]   ;;  %54 = vst.msk [vmem:[#allocation6] sm:$0x1] %vm28_vm0, %v53_v20 }
  0x22   :  { %s128_s21 = scalar_lea.vmem %s72_s16, 16  ;;  %s132_s22 = scalar_lea.vmem %s72_s16, 32 }
  0x23   :  { %p129_p10 = scmp.ne.s32.totalorder %s72_s16, %s128_s21  ;;  %p133_p11 = scmp.lt.s32.totalorder %s72_s16, %s72_s16 }
  0x24   :  { %p134_p12 = scmp.lt.s32.totalorder %s132_s22, %s128_s21 }
  0x26   :  { %p135_p13 = por %p134_p12, %p133_p11 }
  0x28   :  { %p136_p0 = pnand %p135_p13, %p129_p10 }
  0x2a   :  { %139 = shalt.err (!%p136_p0)
}
  0x2b   :  { %74 = dma.vmem_to_hbm [thread:$0]  %s72_s16, 16, %s188_s2, [#allocation7]  }
  0x2c   :  { %150 = dma.done.wait [#allocation4], 16  }
  0x2d   :  { %151 = vsyncadd [#allocation4], 4294967280 }
  0x2e   :  { %152 = dma.done.wait [#allocation7], 16  }
  0x2f   :  { %153 = vsyncadd [#allocation7], 4294967280 }
  0x30   :  { %81 = vsyncpa [#allocation3], 1 }
  0x31   :  { %82 = vsyncpa [#allocation4], 1 }
  0x32   :  { %83 = vsyncpa [#allocation7], 1 }

</bundles_post_ra>
